<compile_context>
chip_gen: v6e
topology: v6e:2x2x1
jax: 0.10.0
libtpu: 0.0.40
codegen_flags: <defaults>
</compile_context>

<pallas_src>
import functools
import math

import jax
import jax.numpy as jnp
from jax.experimental import pallas as pl
from jax.experimental.pallas import tpu as pltpu


def _smooth_l1(x, t, cw, beta):
    # x, t: (TR, LN) f32; cw: (1, LN) f32 broadcast over sublanes.
    t = jnp.where(jnp.isnan(t), x, t)          # NaN targets contribute zero loss
    diff = (x - t) * cw                        # code-wise weights applied to diff
    n = jnp.abs(diff)
    if beta < 1e-5:                            # static branch, mirrors torch code
        return n
    return jnp.where(n < beta, n * n * (0.5 / beta), n - 0.5 * beta)


def _wsl1_weighted_kernel(x_ref, t_ref, cw_ref, w_ref, e_ref, out_ref, *, beta):
    loss = _smooth_l1(x_ref[...].astype(jnp.float32),
                      t_ref[...].astype(jnp.float32),
                      cw_ref[...], beta)
    # Expand compact anchor weights (TR, LN//C) -> (TR, LN) with a 0/1
    # expansion matrix on the (otherwise idle) MXU: lane l gets w[:, l // C].
    w_exp = jnp.dot(w_ref[...].astype(jnp.float32), e_ref[...],
                    preferred_element_type=jnp.float32)
    out_ref[...] = (loss * w_exp).astype(out_ref.dtype)


def _wsl1_unweighted_kernel(x_ref, t_ref, cw_ref, out_ref, *, beta):
    loss = _smooth_l1(x_ref[...].astype(jnp.float32),
                      t_ref[...].astype(jnp.float32),
                      cw_ref[...], beta)
    out_ref[...] = loss.astype(out_ref.dtype)


def _choose_tiling(total, C, itemsize, block_bytes):
    """Pick (LN, TR, M): lane-dense rows, big blocks, no row-padding needed."""
    # Lane width: multiple of 128 (dense vld/vst) and of C (code-weight tiling).
    LN = (128 * C) // math.gcd(128, C)
    M = pl.cdiv(total, LN)                          # rows of the 2-D view
    # VMEM-driven cap on rows per block (per stream), multiple of 8 sublanes,
    # sized from the *actual* element size (bf16/fp16 get 2x bigger tiles).
    tr_cap = max(8, ((block_bytes // (LN * itemsize)) // 8) * 8)
    if M <= 8:
        TR = M                                      # one small block covers all
    else:
        # Aim for >= 4 grid steps (v7x megacore sharding + DMA pipelining),
        # but never below one sublane tile (8 rows) per block.
        TR = min(tr_cap, max(8, (pl.cdiv(M, 4) // 8) * 8))
    return LN, TR, M


@functools.partial(jax.jit, static_argnames=("beta", "block_bytes"))
def weighted_smooth_l1_loss(inp, target, weights=None, *, beta=1.0 / 9.0,
                            code_weights=None, block_bytes=2 << 20):
    """
    Args:
        inp:     (B, #anchors, #codes) float — predicted encodings.
        target:  (B, #anchors, #codes) float — regression targets (may hold NaN).
        weights: (B, #anchors) float or None — anchor-wise weights.
        beta:    smooth-L1 change point (beta < 1e-5 -> pure L1).
        code_weights: (#codes,) float or None — code-wise weights.
        block_bytes: per-stream DMA block target.  ~2 MiB works on all of
            v5e/v6e/v7x with the vmem_limit below; v6e can go to 4 MiB.
    Returns:
        loss: (B, #anchors, #codes) — weighted smooth-L1 loss, no reduction
              (matches the torch module's returned tensor).
    """
    B, A, C = inp.shape
    total = B * A * C
    itemsize = jnp.dtype(inp.dtype).itemsize
    LN, TR, M = _choose_tiling(total, C, itemsize, block_bytes)
    padded = M * LN
    A_row = LN // C                                  # anchors per lane-dense row

    x2 = inp.reshape(-1)
    t2 = target.reshape(-1)

    has_weights = weights is not None
    if has_weights:
        assert weights.shape[0] == B and weights.shape[1] == A
        w_flat = weights.reshape(-1)                 # compact (B*A,), NOT broadcast

    if padded != total:
        # Only the <= LN-1 element remainder needed for the (M, LN) reshape;
        # for realistic anchor counts B*A*C is a multiple of LN and this is
        # skipped entirely (no jnp.pad copy, no output slice).
        x2 = jnp.pad(x2, (0, padded - total))
        t2 = jnp.pad(t2, (0, padded - total))
        if has_weights:
            w_flat = jnp.pad(w_flat, (0, M * A_row - B * A))

    x2 = x2.reshape(M, LN)
    t2 = t2.reshape(M, LN)

    if code_weights is not None:
        cw = jnp.asarray(code_weights, dtype=jnp.float32).reshape(C)
    else:
        cw = jnp.ones((C,), jnp.float32)
    cw_row = jnp.tile(cw, LN // C).reshape(1, LN)    # code index == lane % C

    row_spec = pl.BlockSpec((TR, LN), lambda i: (i, 0))
    cw_spec = pl.BlockSpec((1, LN), lambda i: (0, 0))
    grid = (pl.cdiv(M, TR),)                         # last block may be partial

    args = [x2, t2, cw_row]
    in_specs = [row_spec, row_spec, cw_spec]
    if has_weights:
        w2 = w_flat.reshape(M, A_row)
        # 0/1 expansion matrix: E[a, l] = 1.0 iff lane l belongs to anchor a.
        lane = jax.lax.broadcasted_iota(jnp.int32, (A_row, LN), 1)
        anch = jax.lax.broadcasted_iota(jnp.int32, (A_row, LN), 0)
        expand = (lane // C == anch).astype(jnp.float32)
        args += [w2, expand]
        in_specs += [pl.BlockSpec((TR, A_row), lambda i: (i, 0)),
                     pl.BlockSpec((A_row, LN), lambda i: (0, 0))]
        kernel = functools.partial(_wsl1_weighted_kernel, beta=float(beta))
    else:
        kernel = functools.partial(_wsl1_unweighted_kernel, beta=float(beta))

    out = pl.pallas_call(
        kernel,
        out_shape=jax.ShapeDtypeStruct((M, LN), inp.dtype),
        grid_spec=pltpu.PrefetchScalarGridSpec(
            num_scalar_prefetch=0,
            grid=grid,
            in_specs=in_specs,
            out_specs=row_spec,
        ),
        compiler_params=pltpu.CompilerParams(
            dimension_semantics=("parallel",),
            # Double-buffered x/t/out + small w/cw/E ~= 6-7x block_bytes.
            # 48 MiB fits v7x's 64 MiB physical and lifts v5e's 16 MiB default.
            vmem_limit_bytes=48 * 1024 * 1024),
    )(*args)

    out_flat = out.reshape(-1)
    if padded != total:
        out_flat = out_flat[:total]
    return out_flat.reshape(B, A, C)


def _reference(inp, target, weights=None, beta=1.0 / 9.0, code_weights=None):
    # Pure-JAX mirror of the PyTorch WeightedSmoothL1Loss.forward.
    target = jnp.where(jnp.isnan(target), inp, target)
    diff = inp - target
    if code_weights is not None:
        diff = diff * jnp.asarray(code_weights, jnp.float32).reshape(1, 1, -1)
    n = jnp.abs(diff)
    if beta < 1e-5:
        loss = n
    else:
        loss = jnp.where(n < beta, 0.5 * n * n / beta, n - 0.5 * beta)
    if weights is not None:
        loss = loss * weights[..., None]
    return loss


if __name__ == "__main__":
    key = jax.random.PRNGKey(0)

    # Config 1: weights + code_weights + NaN targets, default beta (single block).
    B, A, C = 2, 16, 4
    k1, k2, k3 = jax.random.split(key, 3)
    inp = jax.random.normal(k1, (B, A, C), dtype=jnp.float32)
    target = inp + 0.3 * jax.random.normal(k2, (B, A, C), dtype=jnp.float32)
    target = target.at[0, 3, 2].set(jnp.nan)
    target = target.at[1, 7, 0].set(jnp.nan)
    weights = jax.random.uniform(k3, (B, A), dtype=jnp.float32)
    code_weights = [1.0, 0.8, 1.2, 0.9]

    loss = weighted_smooth_l1_loss(inp, target, weights,
                                   beta=1.0 / 9.0, code_weights=code_weights)
    jax.block_until_ready(loss)
    ref = _reference(inp, target, weights, beta=1.0 / 9.0,
                     code_weights=code_weights)
    assert loss.shape == (B, A, C)
    assert jnp.allclose(loss, ref, atol=1e-5, rtol=1e-5), (
        f"max abs err {jnp.max(jnp.abs(loss - ref))}")

    # Config 2: no weights / no code_weights, beta < 1e-5 (pure L1), odd C
    # (exercises the unweighted kernel and the small-remainder reshape pad).
    B2, A2, C2 = 2, 16, 7
    k4, k5 = jax.random.split(k3)
    inp2 = jax.random.normal(k4, (B2, A2, C2), dtype=jnp.float32)
    tgt2 = jax.random.normal(k5, (B2, A2, C2), dtype=jnp.float32)
    loss2 = weighted_smooth_l1_loss(inp2, tgt2, None, beta=1e-6)
    jax.block_until_ready(loss2)
    ref2 = _reference(inp2, tgt2, None, beta=1e-6)
    assert loss2.shape == (B2, A2, C2)
    assert jnp.allclose(loss2, ref2, atol=1e-5, rtol=1e-5), (
        f"max abs err {jnp.max(jnp.abs(loss2 - ref2))}")

    # Config 3: multi-block grid with a masked partial final row-block
    # (B*A*C is a multiple of LN -> no reshape pad, M=36 rows, TR=8, grid=5),
    # weighted path with the in-kernel compact-weight expansion.
    B3, A3, C3 = 2, 2304, 7
    k6, k7, k8 = jax.random.split(k5, 3)
    inp3 = jax.random.normal(k6, (B3, A3, C3), dtype=jnp.float32)
    tgt3 = inp3 + 0.2 * jax.random.normal(k7, (B3, A3, C3), dtype=jnp.float32)
    tgt3 = tgt3.at[1, 100, 3].set(jnp.nan)
    w3 = jax.random.uniform(k8, (B3, A3), dtype=jnp.float32)
    cw3 = [1.0, 1.0, 1.0, 1.0, 1.0, 0.7, 1.3]
    loss3 = weighted_smooth_l1_loss(inp3, tgt3, w3, beta=1.0 / 9.0,
                                    code_weights=cw3)
    jax.block_until_ready(loss3)
    ref3 = _reference(inp3, tgt3, w3, beta=1.0 / 9.0, code_weights=cw3)
    assert loss3.shape == (B3, A3, C3)
    assert jnp.allclose(loss3, ref3, atol=1e-5, rtol=1e-5), (
        f"max abs err {jnp.max(jnp.abs(loss3 - ref3))}")

    print("KERNEL_OK")
</pallas_src>

<mosaic_0001>
module attributes {stable_mosaic.version = 11 : i64} {
  func.func @_wsl1_weighted_kernel(%arg0: i32, %arg1: memref<1x128xf32, #tpu.memory_space<vmem>>, %arg2: memref<1x128xf32, #tpu.memory_space<vmem>>, %arg3: memref<1x128xf32, #tpu.memory_space<vmem>>, %arg4: memref<1x32xf32, #tpu.memory_space<vmem>>, %arg5: memref<32x128xf32, #tpu.memory_space<vmem>>, %arg6: memref<1x128xf32, #tpu.memory_space<vmem>>) attributes {dimension_semantics = [#tpu.dimension_semantics<parallel>], iteration_bounds = array<i64: 1>, scalar_prefetch = 0 : i64, scratch_operands = 0 : i64, tpu.core_type = #tpu.core_type<tc>, window_params = [{transform_indices = @transform_0, window_bounds = array<i64: 1, 128>}, {transform_indices = @transform_1, window_bounds = array<i64: 1, 128>}, {pipeline_mode = #tpu.pipeline_mode<synchronous>, transform_indices = @transform_2, window_bounds = array<i64: 1, 128>}, {transform_indices = @transform_3, window_bounds = array<i64: 1, 32>}, {pipeline_mode = #tpu.pipeline_mode<synchronous>, transform_indices = @transform_4, window_bounds = array<i64: 32, 128>}, {transform_indices = @transform_5, window_bounds = array<i64: 1, 128>}]} {
    %c0 = arith.constant 0 : index
    %c0_0 = arith.constant 0 : index
    %0 = vector.load %arg1[%c0, %c0_0] : memref<1x128xf32, #tpu.memory_space<vmem>>, vector<1x128xf32>
    %c0_1 = arith.constant 0 : index
    %c0_2 = arith.constant 0 : index
    %1 = vector.load %arg2[%c0_1, %c0_2] : memref<1x128xf32, #tpu.memory_space<vmem>>, vector<1x128xf32>
    %c0_3 = arith.constant 0 : index
    %c0_4 = arith.constant 0 : index
    %2 = vector.load %arg3[%c0_3, %c0_4] : memref<1x128xf32, #tpu.memory_space<vmem>>, vector<1x128xf32>
    %3 = arith.cmpf one, %1, %1 : vector<1x128xf32>
    %4 = arith.select %3, %0, %1 : vector<1x128xi1>, vector<1x128xf32>
    %5 = arith.subf %0, %4 : vector<1x128xf32>
    %6 = arith.mulf %5, %2 : vector<1x128xf32>
    %7 = math.absf %6 : vector<1x128xf32>
    %cst = arith.constant 0.111111112 : f32
    %8 = vector.broadcast %cst : f32 to vector<1x128xf32>
    %9 = arith.cmpf olt, %7, %8 : vector<1x128xf32>
    %10 = arith.mulf %7, %7 : vector<1x128xf32>
    %cst_5 = arith.constant 4.500000e+00 : f32
    %11 = vector.broadcast %cst_5 : f32 to vector<1x128xf32>
    %12 = arith.mulf %10, %11 : vector<1x128xf32>
    %cst_6 = arith.constant 0.055555556 : f32
    %13 = vector.broadcast %cst_6 : f32 to vector<1x128xf32>
    %14 = arith.subf %7, %13 : vector<1x128xf32>
    %15 = arith.select %9, %12, %14 : vector<1x128xi1>, vector<1x128xf32>
    %c0_7 = arith.constant 0 : index
    %c0_8 = arith.constant 0 : index
    %16 = vector.load %arg4[%c0_7, %c0_8] : memref<1x32xf32, #tpu.memory_space<vmem>>, vector<1x32xf32>
    %c0_9 = arith.constant 0 : index
    %c0_10 = arith.constant 0 : index
    %17 = vector.load %arg5[%c0_9, %c0_10] : memref<32x128xf32, #tpu.memory_space<vmem>>, vector<32x128xf32>
    %cst_11 = arith.constant dense<0.000000e+00> : vector<1x128xf32>
    %18 = tpu.matmul %16, %17, %cst_11 {dimension_numbers = #tpu.dot_dimension_numbers<[1], [0], [0], [1], [0, 0, 1, 1], [], []>} : vector<1x32xf32>, vector<32x128xf32>, vector<1x128xf32> -> vector<1x128xf32>
    %19 = arith.mulf %15, %18 : vector<1x128xf32>
    %c0_12 = arith.constant 0 : index
    %c0_13 = arith.constant 0 : index
    %20 = vector.load %arg6[%c0_12, %c0_13] : memref<1x128xf32, #tpu.memory_space<vmem>>, vector<1x128xf32>
    tpu.vector_store %arg6[%c0_12, %c0_13], %19 {strides = array<i32>} : memref<1x128xf32, #tpu.memory_space<vmem>>, vector<1x128xf32>,
    return
  }
  func.func @transform_0(%arg0: i32) -> (i32, i32) {
    %c0_i32 = arith.constant 0 : i32
    %c0_i32_0 = arith.constant 0 : i32
    return %arg0, %c0_i32 : i32, i32
  }
  func.func @transform_1(%arg0: i32) -> (i32, i32) {
    %c0_i32 = arith.constant 0 : i32
    %c0_i32_0 = arith.constant 0 : i32
    return %arg0, %c0_i32 : i32, i32
  }
  func.func @transform_2(%arg0: i32) -> (i32, i32) {
    %c0_i32 = arith.constant 0 : i32
    %c0_i32_0 = arith.constant 0 : i32
    %c0_i32_1 = arith.constant 0 : i32
    return %c0_i32, %c0_i32_0 : i32, i32
  }
  func.func @transform_3(%arg0: i32) -> (i32, i32) {
    %c0_i32 = arith.constant 0 : i32
    %c0_i32_0 = arith.constant 0 : i32
    return %arg0, %c0_i32 : i32, i32
  }
  func.func @transform_4(%arg0: i32) -> (i32, i32) {
    %c0_i32 = arith.constant 0 : i32
    %c0_i32_0 = arith.constant 0 : i32
    %c0_i32_1 = arith.constant 0 : i32
    return %c0_i32, %c0_i32_0 : i32, i32
  }
  func.func @transform_5(%arg0: i32) -> (i32, i32) {
    %c0_i32 = arith.constant 0 : i32
    %c0_i32_0 = arith.constant 0 : i32
    return %arg0, %c0_i32 : i32, i32
  }
}

</mosaic_0001>

<bundles_post_ra>
// kernel: tile.8
= control target key start
LH: loop header
LB: loop body
LE: loop exit
PB: predicated region body
PF: predicated region fallthrough
CT: control target
= control target key end

     0   :  { %s40_s0 = inlined_call_operand.vmem [shape: f32[4], index: 0, kind: input, shape index: {}]   ;;  %s41_s1 = inlined_call_operand.vmem [shape: f32[32,4], index: 1, kind: output, shape index: {}]  }
   0x1   :  { %v4_v0 = vld [vmem:[%s40_s0] ss:$0 sm:$0xff] }
   0x2   :  { %5 = vst [vmem:[%s41_s1] sm:$0xff] %v4_v0  ;;  %12 = vst [vmem:[%s41_s1 + $0x8] sm:$0xff] %v4_v0 }
   0x3   :  { %13 = vst [vmem:[%s41_s1 + $0x10] sm:$0xff] %v4_v0  ;;  %14 = vst [vmem:[%s41_s1 + $0x18] sm:$0xff] %v4_v0 }

// kernel: tile.9
= control target key start
LH: loop header
LB: loop body
LE: loop exit
PB: predicated region body
PF: predicated region fallthrough
CT: control target
= control target key end

     0   :  { %s261_s10 = smov 124   ;;  %s262_s11 = smov 116   ;;  %vm3_vm0 = vcmask 31744   ;;  %vm9_vm1 = vcmask 1048544   ;;  %vm15_vm2 = vcmask 1015744   ;;  %vm21_vm3 = vcmask 982944   ;;  %s401_s0 = inlined_call_operand.vmem [shape: f32[32,4], index: 0, kind: input, shape index: {}]   ;;  %s402_s1 = inlined_call_operand.vmem [shape: f32[1,128], index: 1, kind: output, shape index: {}]  }
   0x1   :  { %v199_v0 = vld [vmem:[%s401_s0 + $0x1f] sm:$0x1]   ;;  %v201_v1 = vld [vmem:[%s401_s0 + $0x1d] sm:$0x1]   ;;  %v200_v2 = vld [vmem:[%s401_s0 + $0x1e] sm:$0x1]  }
   0x2   :  { %7 = vrot.lane.b32.xlu0 %v199_v0, %s261_s10  ;;  %19 = vrot.lane.b32.xlu1 %v201_v1, %s262_s11  ;;  %v202_v3 = vld [vmem:[%s401_s0 + $0x1c] sm:$0x1]   ;;  %s263_s16 = smov 120   ;;  %s264_s17 = smov 112   ;;  %v203_v4 = vld [vmem:[%s401_s0 + $0x1b] sm:$0x1]  }
   0x3   :  { %v204_v5 = vld [vmem:[%s401_s0 + $0x1a] sm:$0x1]   ;;  %s265_s22 = smov 108   ;;  %s266_s23 = smov 104   ;;  %v205_v6 = vld [vmem:[%s401_s0 + $0x19] sm:$0x1]  }
   0x4   :  { %v206_v7 = vld [vmem:[%s401_s0 + $0x18] sm:$0x1]   ;;  %s267_s28 = smov 100   ;;  %s268_s29 = smov 96   ;;  %v207_v8 = vld [vmem:[%s401_s0 + $0x17] sm:$0x1]  }
   0x5   :  { %v208_v9 = vld [vmem:[%s401_s0 + $0x16] sm:$0x1]   ;;  %v2_v10 = vld [vmem:[%s401_s0] sm:$0x1]   ;;  %s269_s7 = smov 92   ;;  %s270_s8 = smov 88  }
   0x6   :  { %13 = vrot.lane.b32.xlu0 %v200_v2, %s263_s16  ;;  %25 = vrot.lane.b32.xlu1 %v202_v3, %s264_s17  ;;  %4 = vst.msk [vmem:[#allocation0] sm:$0x1] %vm3_vm0, %v2_v10   ;;  %v209_v11 = vld [vmem:[%s401_s0 + $0x15] sm:$0x1]   ;;  %v210_v12 = vld [vmem:[%s401_s0 + $0x14] sm:$0x1]  }
   0x7   :  { %s271_s13 = smov 84   ;;  %s272_s14 = smov 80   ;;  %v211_v13 = vld [vmem:[%s401_s0 + $0x13] sm:$0x1]   ;;  %v212_v14 = vld [vmem:[%s401_s0 + $0x12] sm:$0x1]  }
   0x8   :  { %s273_s19 = smov 76   ;;  %s274_s20 = smov 72   ;;  %v213_v15 = vld [vmem:[%s401_s0 + $0x11] sm:$0x1]   ;;  %v214_v16 = vld [vmem:[%s401_s0 + $0x10] sm:$0x1]  }
   0x9   :  { %s275_s25 = smov 68   ;;  %s276_s26 = smov 64   ;;  %v215_v17 = vld [vmem:[%s401_s0 + $0xf] sm:$0x1]   ;;  %v216_v18 = vld [vmem:[%s401_s0 + $0xe] sm:$0x1]  }
   0xa   :  { %31 = vrot.lane.b32.xlu0 %v203_v4, %s265_s22  ;;  %37 = vrot.lane.b32.xlu1 %v204_v5, %s266_s23  ;;  %s277_s2 = smov 60   ;;  %s278_s3 = smov 56   ;;  %v217_v19 = vld [vmem:[%s401_s0 + $0xd] sm:$0x1]   ;;  %v218_v20 = vld [vmem:[%s401_s0 + $0xc] sm:$0x1]  }
   0xb   :  { %s280_s9 = smov 48   ;;  %v219_v21 = vld [vmem:[%s401_s0 + $0xb] sm:$0x1]   ;;  %v220_v22 = vld [vmem:[%s401_s0 + $0xa] sm:$0x1]   ;;  %s282_s15 = smov 40  }
   0xc   :  { %v221_v23 = vld [vmem:[%s401_s0 + $0x9] sm:$0x1]   ;;  %v222_v24 = vld [vmem:[%s401_s0 + $0x8] sm:$0x1]   ;;  %s284_s21 = smov 32   ;;  %s286_s27 = smov 24  }
   0xd   :  { %v223_v25 = vld [vmem:[%s401_s0 + $0x7] sm:$0x1]   ;;  %v224_v26 = vld [vmem:[%s401_s0 + $0x6] sm:$0x1]   ;;  %v225_v27 = vld [vmem:[%s401_s0 + $0x5] sm:$0x1]  }
   0xe   :  { %43 = vrot.lane.b32.xlu0 %v205_v6, %s267_s28  ;;  %49 = vrot.lane.b32.xlu1 %v206_v7, %s268_s29  ;;  %v226_v28 = vld [vmem:[%s401_s0 + $0x4] sm:$0x1]   ;;  %s288_s4 = smov 16   ;;  %v227_v29 = vld [vmem:[%s401_s0 + $0x3] sm:$0x1]   ;;  %s290_s10 = smov 8  }
   0xf   :  { %v228_v30 = vld [vmem:[%s401_s0 + $0x2] sm:$0x1]   ;;  %v229_v31 = vld [vmem:[%s401_s0 + $0x1] sm:$0x1]   ;;  %s291_s0 = smov 4   ;;  %vm27_vm4 = vcmask 950144  }
  0x10   :  { %vm33_vm5 = vcmask 917344   ;;  %vm39_vm6 = vcmask 884544   ;;  %vm45_vm7 = vcmask 851744   ;;  %vm51_vm8 = vcmask 818944  }
  0x11   :  { %vm57_vm9 = vcmask 786144   ;;  %vm63_vm10 = vcmask 753344   ;;  %vm69_vm11 = vcmask 720544   ;;  %vm75_vm12 = vcmask 687744  }
  0x12   :  { %55 = vrot.lane.b32.xlu0 %v207_v8, %s269_s7  ;;  %61 = vrot.lane.b32.xlu1 %v208_v9, %s270_s8  ;;  %s279_s8 = smov 52   ;;  %vm81_vm13 = vcmask 654944   ;;  %vm87_vm14 = vcmask 622144   ;;  %vm93_vm15 = vcmask 589344   ;;  %vm99_vm0 = vcmask 556544  }
  0x16   :  { %67 = vrot.lane.b32.xlu0 %v209_v11, %s271_s13  ;;  %73 = vrot.lane.b32.xlu1 %v210_v12, %s272_s14  ;;  %s281_s14 = smov 44  }
  0x1a   :  { %79 = vrot.lane.b32.xlu0 %v211_v13, %s273_s19  ;;  %85 = vrot.lane.b32.xlu1 %v212_v14, %s274_s20  ;;  %s283_s20 = smov 36  }
  0x1e   :  { %91 = vrot.lane.b32.xlu0 %v213_v15, %s275_s25  ;;  %97 = vrot.lane.b32.xlu1 %v214_v16, %s276_s26  ;;  %s285_s26 = smov 28  }
  0x22   :  { %103 = vrot.lane.b32.xlu0 %v215_v17, %s277_s2  ;;  %109 = vrot.lane.b32.xlu1 %v216_v18, %s278_s3  ;;  %s287_s3 = smov 20  }
  0x26   :  { %115 = vrot.lane.b32.xlu0 %v217_v19, %s279_s8  ;;  %121 = vrot.lane.b32.xlu1 %v218_v20, %s280_s9  ;;  %s289_s9 = smov 12  }
  0x2a   :  { %127 = vrot.lane.b32.xlu0 %v219_v21, %s281_s14  ;;  %133 = vrot.lane.b32.xlu1 %v220_v22, %s282_s15 }
  0x2e   :  { %139 = vrot.lane.b32.xlu0 %v221_v23, %s283_s20  ;;  %145 = vrot.lane.b32.xlu1 %v222_v24, %s284_s21 }
  0x32   :  { %151 = vrot.lane.b32.xlu0 %v223_v25, %s285_s26  ;;  %157 = vrot.lane.b32.xlu1 %v224_v26, %s286_s27 }
  0x36   :  { %163 = vrot.lane.b32.xlu0 %v225_v27, %s287_s3  ;;  %169 = vrot.lane.b32.xlu1 %v226_v28, %s288_s4 }
  0x3a   :  { %175 = vrot.lane.b32.xlu0 %v227_v29, %s289_s9  ;;  %181 = vrot.lane.b32.xlu1 %v228_v30, %s290_s10 }
  0x3e   :  { %187 = vrot.lane.b32.xlu0 %v229_v31, %s291_s0 }
  0x74   :  { %v8_v32 = vpop.permute.xlu0 %7   ;;  %v20_v33 = vpop.permute.xlu1 %19  }
  0x75   :  { %10 = vst.msk [vmem:[#allocation0] sm:$0x1] %vm9_vm1, %v8_v32   ;;  %vm105_vm1 = vcmask 523744  }
  0x78   :  { %v14_v34 = vpop.permute.xlu0 %13   ;;  %v26_v35 = vpop.permute.xlu1 %25  }
  0x79   :  { %16 = vst.msk [vmem:[#allocation0] sm:$0x1] %vm15_vm2, %v14_v34   ;;  %vm111_vm2 = vcmask 490944  }
  0x7a   :  { %22 = vst.msk [vmem:[#allocation0] sm:$0x1] %vm21_vm3, %v20_v33   ;;  %vm117_vm3 = vcmask 458144  }
  0x7b   :  { %28 = vst.msk [vmem:[#allocation0] sm:$0x1] %vm27_vm4, %v26_v35   ;;  %vm123_vm4 = vcmask 425344  }
  0x7c   :  { %v32_v36 = vpop.permute.xlu0 %31   ;;  %v38_v37 = vpop.permute.xlu1 %37  }
  0x7d   :  { %34 = vst.msk [vmem:[#allocation0] sm:$0x1] %vm33_vm5, %v32_v36   ;;  %vm129_vm5 = vcmask 392544  }
  0x7e   :  { %40 = vst.msk [vmem:[#allocation0] sm:$0x1] %vm39_vm6, %v38_v37   ;;  %vm135_vm6 = vcmask 359744  }
  0x80   :  { %v44_v38 = vpop.permute.xlu0 %43   ;;  %v50_v39 = vpop.permute.xlu1 %49  }
  0x81   :  { %46 = vst.msk [vmem:[#allocation0] sm:$0x1] %vm45_vm7, %v44_v38   ;;  %vm141_vm7 = vcmask 326944  }
  0x82   :  { %52 = vst.msk [vmem:[#allocation0] sm:$0x1] %vm51_vm8, %v50_v39   ;;  %vm147_vm8 = vcmask 294144  }
  0x84   :  { %v56_v40 = vpop.permute.xlu0 %55   ;;  %v62_v41 = vpop.permute.xlu1 %61  }
  0x85   :  { %58 = vst.msk [vmem:[#allocation0] sm:$0x1] %vm57_vm9, %v56_v40   ;;  %vm153_vm9 = vcmask 261344  }
  0x86   :  { %64 = vst.msk [vmem:[#allocation0] sm:$0x1] %vm63_vm10, %v62_v41   ;;  %vm159_vm10 = vcmask 228544  }
  0x88   :  { %v68_v42 = vpop.permute.xlu0 %67   ;;  %v74_v43 = vpop.permute.xlu1 %73  }
  0x89   :  { %70 = vst.msk [vmem:[#allocation0] sm:$0x1] %vm69_vm11, %v68_v42   ;;  %vm165_vm11 = vcmask 195744  }
  0x8a   :  { %76 = vst.msk [vmem:[#allocation0] sm:$0x1] %vm75_vm12, %v74_v43   ;;  %vm171_vm12 = vcmask 162944  }
  0x8c   :  { %v80_v44 = vpop.permute.xlu0 %79   ;;  %v86_v45 = vpop.permute.xlu1 %85  }
  0x8d   :  { %82 = vst.msk [vmem:[#allocation0] sm:$0x1] %vm81_vm13, %v80_v44   ;;  %vm177_vm13 = vcmask 130144  }
  0x8e   :  { %88 = vst.msk [vmem:[#allocation0] sm:$0x1] %vm87_vm14, %v86_v45   ;;  %vm183_vm14 = vcmask 97344  }
  0x90   :  { %v92_v46 = vpop.permute.xlu0 %91   ;;  %v98_v47 = vpop.permute.xlu1 %97  }
  0x91   :  { %94 = vst.msk [vmem:[#allocation0] sm:$0x1] %vm93_vm15, %v92_v46   ;;  %vm189_vm15 = vcmask 64544  }
  0x92   :  { %100 = vst.msk [vmem:[#allocation0] sm:$0x1] %vm99_vm0, %v98_v47  }
  0x94   :  { %v104_v48 = vpop.permute.xlu0 %103   ;;  %v110_v49 = vpop.permute.xlu1 %109  }
  0x95   :  { %106 = vst.msk [vmem:[#allocation0] sm:$0x1] %vm105_vm1, %v104_v48  }
  0x96   :  { %112 = vst.msk [vmem:[#allocation0] sm:$0x1] %vm111_vm2, %v110_v49  }
  0x98   :  { %v116_v50 = vpop.permute.xlu0 %115   ;;  %v122_v51 = vpop.permute.xlu1 %121  }
  0x99   :  { %118 = vst.msk [vmem:[#allocation0] sm:$0x1] %vm117_vm3, %v116_v50  }
  0x9a   :  { %124 = vst.msk [vmem:[#allocation0] sm:$0x1] %vm123_vm4, %v122_v51  }
  0x9c   :  { %v128_v52 = vpop.permute.xlu0 %127   ;;  %v134_v53 = vpop.permute.xlu1 %133  }
  0x9d   :  { %130 = vst.msk [vmem:[#allocation0] sm:$0x1] %vm129_vm5, %v128_v52  }
  0x9e   :  { %136 = vst.msk [vmem:[#allocation0] sm:$0x1] %vm135_vm6, %v134_v53  }
  0xa0   :  { %v140_v54 = vpop.permute.xlu0 %139   ;;  %v146_v55 = vpop.permute.xlu1 %145  }
  0xa1   :  { %142 = vst.msk [vmem:[#allocation0] sm:$0x1] %vm141_vm7, %v140_v54  }
  0xa2   :  { %148 = vst.msk [vmem:[#allocation0] sm:$0x1] %vm147_vm8, %v146_v55  }
  0xa4   :  { %v152_v56 = vpop.permute.xlu0 %151   ;;  %v158_v57 = vpop.permute.xlu1 %157  }
  0xa5   :  { %154 = vst.msk [vmem:[#allocation0] sm:$0x1] %vm153_vm9, %v152_v56  }
  0xa6   :  { %160 = vst.msk [vmem:[#allocation0] sm:$0x1] %vm159_vm10, %v158_v57  }
  0xa8   :  { %v164_v58 = vpop.permute.xlu0 %163   ;;  %v170_v59 = vpop.permute.xlu1 %169  }
  0xa9   :  { %166 = vst.msk [vmem:[#allocation0] sm:$0x1] %vm165_vm11, %v164_v58  }
  0xaa   :  { %172 = vst.msk [vmem:[#allocation0] sm:$0x1] %vm171_vm12, %v170_v59  }
  0xac   :  { %v176_v60 = vpop.permute.xlu0 %175   ;;  %v182_v61 = vpop.permute.xlu1 %181  }
  0xad   :  { %178 = vst.msk [vmem:[#allocation0] sm:$0x1] %vm177_vm13, %v176_v60  }
  0xae   :  { %184 = vst.msk [vmem:[#allocation0] sm:$0x1] %vm183_vm14, %v182_v61  }
  0xb0   :  { %v188_v62 = vpop.permute.xlu0 %187  }
  0xb1   :  { %190 = vst.msk [vmem:[#allocation0] sm:$0x1] %vm189_vm15, %v188_v62  }
  0xb8   :  { %v195_v63 = vld [vmem:[#allocation0] sm:$0x1] }
  0xb9   :  { %198 = vst [vmem:[%s402_s1] sm:$0x1] %v195_v63 }

// kernel: weighted_smooth_l1_loss.1
= control target key start
LH: loop header
LB: loop body
LE: loop exit
PB: predicated region body
PF: predicated region fallthrough
CT: control target
= control target key end

     0   :  { %v138_v0 = vmov 0.0   ;;  %vm139_vm0 = vmmov 0   ;;  %vm38_vm1 = vcmask 261120   ;;  %s197_s4 = inlined_call_operand.vmem [shape: f32[32,128], index: 4, kind: input, shape index: {}]   ;;  %s198_s3 = inlined_call_operand.vmem [shape: f32[1,32], index: 3, kind: input, shape index: {}]   ;;  %s199_s1 = inlined_call_operand.vmem [shape: f32[1,128], index: 1, kind: input, shape index: {}]   ;;  %s200_s0 = inlined_call_operand.vmem [shape: f32[1,128], index: 0, kind: input, shape index: {}]   ;;  %s201_s2 = inlined_call_operand.vmem [shape: f32[1,128], index: 2, kind: input, shape index: {}]   ;;  %s202_s5 = inlined_call_operand.vmem [shape: f32[1,128], index: 5, kind: output, shape index: {}]  }
   0x1   :  { %125 = vmatprep.subr.mxu0 %v138_v0  ;;  %v37_v1 = vld [vmem:[%s197_s4 + $0x18] sm:$0xff]  ;;  %v36_v2 = vld [vmem:[%s197_s4 + $0x10] sm:$0xff]  ;;  %133 = vmatprep.mubr.msk.f32.mxu0 %vm139_vm0, %v138_v0  ;;  %v35_v3 = vld [vmem:[%s197_s4 + $0x8] sm:$0xff] }
   0x2   :  { %126 = vmatpush3.msra.mxu0 %v37_v1  ;;  %v34_v4 = vld [vmem:[%s197_s4] sm:$0xff] }
   0x3   :  { %127 = vmatprep.subr.mxu0 %v138_v0  ;;  %v33_v5 = vld [vmem:[%s198_s3] sm:$0x1] }
   0x4   :  { %128 = vmatpush3.msra.mxu0 %v36_v2  ;;  %v21_v6 = vld [vmem:[%s199_s1] sm:$0x1] }
   0x5   :  { %129 = vmatprep.subr.mxu0 %v138_v0  ;;  %v20_v7 = vld [vmem:[%s200_s0] sm:$0x1]  ;;  %vm23_vm2 = vcmp.ne.f32.partialorder %v21_v6, %v21_v6 }
   0x6   :  { %130 = vmatpush3.msra.mxu0 %v35_v3  ;;  %v24_v8 = vsel %vm23_vm2, %v20_v7, %v21_v6  ;;  %v22_v10 = vld [vmem:[%s201_s2] sm:$0x1] }
   0x7   :  { %131 = vmatprep.subr.mxu0 %v138_v0  ;;  %v25_v9 = vsub.f32 %v20_v7, %v24_v8 }
   0x8   :  { %132 = vmatpush3.msra.mxu0 %v34_v4 }
   0x9   :  { %134 = vmatmul.mubr.msk.f32.vlgmr.msra.gmra.mxu0 %vm38_vm1, %v33_v5  ;;  %v26_v11 = vmul.f32 %v25_v9, %v22_v10 }
   0xb   :  { %v27_v12 = vand.u32 2147483647, %v26_v11 }
   0xd   :  { %v29_v13 = vmul.f32 %v27_v12, %v27_v12  ;;  %v118_v15 = vadd.f32 -0.055555556, %v27_v12  ;;  %vm28_vm3 = vcmp.lt.f32.partialorder %v27_v12, 0.11111111 }
   0xf   :  { %v30_v14 = vmul.f32 4.5, %v29_v13 }
  0x11   :  { %v32_v16 = vsel %vm28_vm3, %v30_v14, %v118_v15 }
  0xc9   :  { %v108_v17 = vpop.f32.mrf.mxu0 }
  0xca   :  { %v112_v18 = vmul.f32 %v108_v17, %v32_v16 }
  0xcb   :  { %v135_v19 = vpop.f32.mrf.mxu0 }
  0xcc   :  { %113 = vst [vmem:[%s202_s5] sm:$0x1] %v112_v18 }

</bundles_post_ra>
